<compile_context>
chip_gen: v7x
topology: tpu7x:2x2x1
jax: 0.10.0
libtpu: 0.0.40
codegen_flags: <defaults>
</compile_context>

<pallas_src>
import functools

import jax
import jax.numpy as jnp
from jax.experimental import pallas as pl
from jax.experimental.pallas import tpu as pltpu


def _matmul_epilogue_kernel(x_ref, w_ref, b_ref, o_ref, acc_ref, *, epilogue):
    """One (row_tile, k_tile) grid step of  epilogue(X @ W + b)."""
    k = pl.program_id(1)

    @pl.when(k == 0)
    def _init():
        acc_ref[...] = jnp.zeros_like(acc_ref)

    # bf16 operands, f32 accumulation on the MXU.
    acc_ref[...] += jnp.dot(
        x_ref[...].astype(jnp.bfloat16),
        w_ref[...].astype(jnp.bfloat16),
        preferred_element_type=jnp.float32,
    )

    @pl.when(k == pl.num_programs(1) - 1)
    def _finalize():
        r = acc_ref[...] + b_ref[...]
        if epilogue == "relu":
            r = jnp.maximum(r, 0.0)
        elif epilogue == "softmax":
            # Row-wise softmax over the (lane-dense, possibly padded) last dim.
            m = jnp.max(r, axis=1, keepdims=True)
            e = jnp.exp(r - m)
            s = jnp.sum(e, axis=1, keepdims=True)
            r = e * pl.reciprocal(s, approx=True)   # EUP, off the VALU slots
        o_ref[...] = r.astype(o_ref.dtype)


def _pick_tile(dim, target):
    """Largest safe tile <= target that evenly tiles `dim` (full dim for small)."""
    if dim <= target:
        return dim
    for t in (target, 256, 128, 8):
        if t <= dim and dim % t == 0:
            return t
    return dim


def fused_matmul(x, w, b, *, rows=None, epilogue="none",
                 out_dtype=jnp.float32, tm_target=256, tk_target=512):
    """epilogue(x[:rows] @ w + b), tiled over (row_tiles, K_tiles).

    x : (M, K)   streamed (TM, TK) tiles, double-buffered by BlockSpec.
    w : (K, Nout) streamed (TK, Nout) tiles along K; b : (1, Nout) resident.
    rows: restrict the computation to the first `rows` rows of x (row-tile grid
          only visits those blocks) -- used for the num_document restriction.
    """
    m_full, kdim = x.shape
    kdim_w, nout = w.shape
    assert kdim == kdim_w
    rows = m_full if rows is None else rows

    tm = _pick_tile(rows, tm_target)
    tk = _pick_tile(kdim, tk_target)
    grid = (rows // tm, kdim // tk)

    kernel = functools.partial(_matmul_epilogue_kernel, epilogue=epilogue)

    return pl.pallas_call(
        kernel,
        out_shape=jax.ShapeDtypeStruct((rows, nout), out_dtype),
        grid_spec=pltpu.PrefetchScalarGridSpec(
            num_scalar_prefetch=0,
            grid=grid,
            in_specs=[
                pl.BlockSpec((tm, tk), lambda i, k: (i, k)),     # A / x tile
                pl.BlockSpec((tk, nout), lambda i, k: (k, 0)),   # weight / rhs
                pl.BlockSpec((1, nout), lambda i, k: (0, 0)),    # bias (resident)
            ],
            out_specs=pl.BlockSpec((tm, nout), lambda i, k: (i, 0)),
            scratch_shapes=[pltpu.VMEM((tm, nout), jnp.float32)],
        ),
        compiler_params=pltpu.CompilerParams(
            # Row axis parallel (shards across v7x's 2 TCs), K reduction last.
            dimension_semantics=("parallel", "arbitrary"),
            # Fits v7x's 64 MiB physical / 32 MiB default-scoped VMEM.
            vmem_limit_bytes=32 * 1024 * 1024,
        ),
    )(x, w, b)


def textgcn_forward(A, x, W0, b0, W1, b1, num_document):
    N, F = x.shape
    E = W0.shape[1]
    C = W1.shape[1]

    # Lane-dense padding of the tiny class dim: W1 columns padded with 0,
    # b1 padded with -1e30 so the padded logits get exactly 0 softmax mass.
    c_pad = pl.cdiv(C, 128) * 128
    if c_pad != C:
        W1p = jnp.pad(W1, ((0, 0), (0, c_pad - C)))
        b1p = jnp.pad(b1, ((0, 0), (0, c_pad - C)), constant_values=-1e30)
    else:
        W1p, b1p = W1, b1

    zeros_e = jnp.zeros((1, E), jnp.float32)
    zeros_c = jnp.zeros((1, c_pad), jnp.float32)

    # Layer 0, re-associated:  h = relu(A @ (x @ W0) + b0)
    xw = fused_matmul(x, W0, zeros_e)                              # (N, E)
    h = fused_matmul(A, xw, b0, epilogue="relu")                   # (N, E)

    # Layer 1, re-associated + restricted to the document rows of A:
    #   out = softmax(A[:D] @ (h @ W1) + b1)
    hw = fused_matmul(h, W1p, zeros_c)                             # (N, c_pad)
    out = fused_matmul(A, hw, b1p, rows=num_document,
                       epilogue="softmax")                         # (D, c_pad)

    return out[:, :C]


def reference_forward(A, x, W0, b0, W1, b1, num_document):
    h = jnp.maximum(A @ x @ W0 + b0, 0.0)
    logits = A @ h @ W1 + b1
    return jax.nn.softmax(logits[:num_document], axis=1)


if __name__ == "__main__":
    # Small synthetic config consistent with the module's __init__.
    num_nodes = 32       # config.num_nodes
    num_document = 16    # config.num_document
    embedding_dim = 32   # config.embedding_dim
    num_classes = 8      # config.num_classes

    key = jax.random.PRNGKey(0)
    kA, kx, kw0, kb0, kw1, kb1 = jax.random.split(key, 6)

    # Deterministic synthetic adjacency (symmetric, row-normalized-ish) & params.
    A_raw = jax.random.uniform(kA, (num_nodes, num_nodes), jnp.float32)
    A = (A_raw + A_raw.T) / (2.0 * num_nodes)
    x = jax.random.normal(kx, (num_nodes, num_nodes), jnp.float32)

    W0 = jax.random.normal(kw0, (num_nodes, embedding_dim), jnp.float32) * 0.1
    b0 = jax.random.normal(kb0, (1, embedding_dim), jnp.float32) * 0.1
    W1 = jax.random.normal(kw1, (embedding_dim, num_classes), jnp.float32) * 0.1
    b1 = jax.random.normal(kb1, (1, num_classes), jnp.float32) * 0.1

    out = textgcn_forward(A, x, W0, b0, W1, b1, num_document)
    out = jax.block_until_ready(out)

    ref = reference_forward(A, x, W0, b0, W1, b1, num_document)
    assert out.shape == (num_document, num_classes)
    # bf16 matmul operands + approx reciprocal -> loose-but-meaningful tolerance.
    assert jnp.allclose(out, ref, atol=2e-2, rtol=2e-2), (
        float(jnp.max(jnp.abs(out - ref))))

    print("KERNEL_OK")
</pallas_src>

<mosaic_0001>
module attributes {stable_mosaic.version = 11 : i64} {
  func.func @_matmul_epilogue_kernel(%arg0: i32, %arg1: i32, %arg2: memref<32x32xf32, #tpu.memory_space<vmem>>, %arg3: memref<32x32xf32, #tpu.memory_space<vmem>>, %arg4: memref<1x32xf32, #tpu.memory_space<vmem>>, %arg5: memref<32x32xf32, #tpu.memory_space<vmem>>, %arg6: memref<32x32xf32, #tpu.memory_space<vmem>>) attributes {dimension_semantics = [#tpu.dimension_semantics<parallel>, #tpu.dimension_semantics<arbitrary>], iteration_bounds = array<i64: 1, 1>, scalar_prefetch = 0 : i64, scratch_operands = 1 : i64, tpu.core_type = #tpu.core_type<tc>, window_params = [{transform_indices = @transform_0, window_bounds = array<i64: 32, 32>}, {transform_indices = @transform_1, window_bounds = array<i64: 32, 32>}, {pipeline_mode = #tpu.pipeline_mode<synchronous>, transform_indices = @transform_2, window_bounds = array<i64: 1, 32>}, {transform_indices = @transform_3, window_bounds = array<i64: 32, 32>}]} {
    %c0_i32 = arith.constant 0 : i32
    %0 = arith.cmpi eq, %arg1, %c0_i32 : i32
    %1 = arith.extui %0 : i1 to i32
    %c0_i32_0 = arith.constant 0 : i32
    %2 = arith.cmpi ne, %1, %c0_i32_0 : i32
    scf.if %2 {
      %cst_10 = arith.constant 0.000000e+00 : f32
      %14 = vector.broadcast %cst_10 : f32 to vector<32x32xf32>
      %c0_11 = arith.constant 0 : index
      %c0_12 = arith.constant 0 : index
      %15 = vector.load %arg6[%c0_11, %c0_12] : memref<32x32xf32, #tpu.memory_space<vmem>>, vector<32x32xf32>
      tpu.vector_store %arg6[%c0_11, %c0_12], %14 {strides = array<i32>} : memref<32x32xf32, #tpu.memory_space<vmem>>, vector<32x32xf32>,
    } else {
    }
    %c0 = arith.constant 0 : index
    %c0_1 = arith.constant 0 : index
    %3 = vector.load %arg6[%c0, %c0_1] : memref<32x32xf32, #tpu.memory_space<vmem>>, vector<32x32xf32>
    %c0_2 = arith.constant 0 : index
    %c0_3 = arith.constant 0 : index
    %4 = vector.load %arg2[%c0_2, %c0_3] : memref<32x32xf32, #tpu.memory_space<vmem>>, vector<32x32xf32>
    %5 = arith.truncf %4 : vector<32x32xf32> to vector<32x32xbf16>
    %c0_4 = arith.constant 0 : index
    %c0_5 = arith.constant 0 : index
    %6 = vector.load %arg3[%c0_4, %c0_5] : memref<32x32xf32, #tpu.memory_space<vmem>>, vector<32x32xf32>
    %7 = arith.truncf %6 : vector<32x32xf32> to vector<32x32xbf16>
    %cst = arith.constant dense<0.000000e+00> : vector<32x32xf32>
    %8 = tpu.matmul %5, %7, %cst {dimension_numbers = #tpu.dot_dimension_numbers<[1], [0], [0], [1], [0, 0, 1, 1], [], []>} : vector<32x32xbf16>, vector<32x32xbf16>, vector<32x32xf32> -> vector<32x32xf32>
    %9 = arith.addf %3, %8 : vector<32x32xf32>
    %c0_6 = arith.constant 0 : index
    %c0_7 = arith.constant 0 : index
    %10 = vector.load %arg6[%c0_6, %c0_7] : memref<32x32xf32, #tpu.memory_space<vmem>>, vector<32x32xf32>
    tpu.vector_store %arg6[%c0_6, %c0_7], %9 {strides = array<i32>} : memref<32x32xf32, #tpu.memory_space<vmem>>, vector<32x32xf32>,
    %c0_i32_8 = arith.constant 0 : i32
    %11 = arith.cmpi eq, %arg1, %c0_i32_8 : i32
    %12 = arith.extui %11 : i1 to i32
    %c0_i32_9 = arith.constant 0 : i32
    %13 = arith.cmpi ne, %12, %c0_i32_9 : i32
    scf.if %13 {
      %c0_10 = arith.constant 0 : index
      %c0_11 = arith.constant 0 : index
      %14 = vector.load %arg6[%c0_10, %c0_11] : memref<32x32xf32, #tpu.memory_space<vmem>>, vector<32x32xf32>
      %c0_12 = arith.constant 0 : index
      %c0_13 = arith.constant 0 : index
      %15 = vector.load %arg4[%c0_12, %c0_13] : memref<1x32xf32, #tpu.memory_space<vmem>>, vector<1x32xf32>
      %16 = vector.broadcast %15 : vector<1x32xf32> to vector<32x32xf32>
      %17 = arith.addf %14, %16 : vector<32x32xf32>
      %c0_14 = arith.constant 0 : index
      %c0_15 = arith.constant 0 : index
      %18 = vector.load %arg5[%c0_14, %c0_15] : memref<32x32xf32, #tpu.memory_space<vmem>>, vector<32x32xf32>
      tpu.vector_store %arg5[%c0_14, %c0_15], %17 {strides = array<i32>} : memref<32x32xf32, #tpu.memory_space<vmem>>, vector<32x32xf32>,
    } else {
    }
    return
  }
  func.func @transform_0(%arg0: i32, %arg1: i32) -> (i32, i32) {
    %c0_i32 = arith.constant 0 : i32
    return %arg0, %arg1 : i32, i32
  }
  func.func @transform_1(%arg0: i32, %arg1: i32) -> (i32, i32) {
    %c0_i32 = arith.constant 0 : i32
    %c0_i32_0 = arith.constant 0 : i32
    return %arg1, %c0_i32 : i32, i32
  }
  func.func @transform_2(%arg0: i32, %arg1: i32) -> (i32, i32) {
    %c0_i32 = arith.constant 0 : i32
    %c0_i32_0 = arith.constant 0 : i32
    %c0_i32_1 = arith.constant 0 : i32
    return %c0_i32, %c0_i32_0 : i32, i32
  }
  func.func @transform_3(%arg0: i32, %arg1: i32) -> (i32, i32) {
    %c0_i32 = arith.constant 0 : i32
    %c0_i32_0 = arith.constant 0 : i32
    return %arg0, %c0_i32 : i32, i32
  }
}

</mosaic_0001>

<bundles_post_ra>
// kernel: tpu_custom_call.1
= control target key start
LH: loop header
LB: loop body
LE: loop exit
PB: predicated region body
PF: predicated region fallthrough
CT: control target
= control target key end

     0   :  { %8 = vsyncpa [#allocation4], 0  ;;  %s354_s0 = inlined_call_operand.hbm [shape: f32[32,32], index: 0, kind: input, shape index: {}]   ;;  %s355_s1 = inlined_call_operand.hbm [shape: f32[32,32], index: 1, kind: input, shape index: {}]   ;;  %s356_s2 = inlined_call_operand.vmem [shape: f32[1,32], index: 2, kind: input, shape index: {}]   ;;  %s357_s3 = inlined_call_operand.hbm [shape: f32[32,32], index: 3, kind: output, shape index: {}]  }
   0x1   :  { %9 = vsyncpa [#allocation7], 0 }
   0x2   :  { %10 = vsyncpa [#allocation5], 0  ;;  %s266_s12 = smov [#allocation3]   ;;  %s194_s16 = scalar_lea.hbm %s354_s0, 512 }
   0x3   :  { %s16_s13 = sshll.u32 %s266_s12, 4  ;;  %p195_p0 = scmp.ne.s32.totalorder %s354_s0, %s194_s16  ;;  %s17_s13 = int_to_ptr.vmem [resolvable:$true] %s16_s13 }
   0x4   :  { %p198_p1 = scmp.lt.u32.totalorder %s194_s16, %s354_s0 }
   0x6   :  { %p200_p2 = pnand %p198_p1, %p195_p0 }
   0x8   :  { %203 = shalt.err (!%p200_p2)
}
   0x9   :  { %s204_s21 = scalar_lea.vmem %s17_s13, 512  ;;  %p209_p4 = scmp.lt.s32.totalorder %s17_s13, %s17_s13 }
   0xa   :  { %p205_p3 = scmp.ne.s32.totalorder %s17_s13, %s204_s21  ;;  %p210_p5 = scmp.lt.s32.totalorder %s204_s21, %s204_s21 }
   0xc   :  { %p211_p6 = por %p210_p5, %p209_p4 }
   0xe   :  { %p212_p7 = pnand %p211_p6, %p205_p3 }
  0x10   :  { %215 = shalt.err (!%p212_p7)
}
  0x11   :  { %s267_s22 = smov 128   ;;  %s268_s23 = smov 8  }
  0x12   :  { %22 = dma.hbm_to_vmem [thread:$0]  %s354_s0, 512, %s17_s13, [#allocation4], %s267_s22, %s267_s22, %s268_s23  }
  0x13   :  { %s269_s26 = smov [#allocation6]   ;;  %s216_s30 = scalar_lea.hbm %s355_s1, 512 }
  0x14   :  { %s28_s27 = sshll.u32 %s269_s26, 4  ;;  %p217_p8 = scmp.ne.s32.totalorder %s355_s1, %s216_s30  ;;  %s29_s27 = int_to_ptr.vmem [resolvable:$true] %s28_s27 }
  0x15   :  { %p220_p9 = scmp.lt.u32.totalorder %s216_s30, %s355_s1 }
  0x17   :  { %p222_p10 = pnand %p220_p9, %p217_p8 }
  0x19   :  { %225 = shalt.err (!%p222_p10)
}
  0x1a   :  { %s226_s8 = scalar_lea.vmem %s29_s27, 512  ;;  %p231_p12 = scmp.lt.s32.totalorder %s29_s27, %s29_s27 }
  0x1b   :  { %p227_p11 = scmp.ne.s32.totalorder %s29_s27, %s226_s8  ;;  %p232_p13 = scmp.lt.s32.totalorder %s226_s8, %s226_s8 }
  0x1d   :  { %p233_p0 = por %p232_p13, %p231_p12 }
  0x1f   :  { %p234_p1 = pnand %p233_p0, %p227_p11 }
  0x21   :  { %237 = shalt.err (!%p234_p1)
}
  0x22   :  { %34 = dma.hbm_to_vmem [thread:$0]  %s355_s1, 512, %s29_s27, [#allocation7], %s267_s22, %s267_s22, %s268_s23  }
  0x23   :  { %260 = dma.done.wait [#allocation4], 512  }
  0x24   :  { %261 = vsyncadd [#allocation4], 4294966784 }
  0x25   :  { %262 = dma.done.wait [#allocation7], 512  }
  0x26   :  { %263 = vsyncadd [#allocation7], 4294966784  ;;  %vm48_vm0 = vcmask 261120   ;;  %v270_v0 = vmov 0.0   ;;  %v63_v1 = vld [vmem:[#allocation6] sm:$0xff]  ;;  %v64_v2 = vld [vmem:[#allocation6 + $0x8] sm:$0xff] }
  0x27   :  { %51 = vst.msk [vmem:[#allocation2 + $0x10] sm:$0xff] %vm48_vm0, %v270_v0  ;;  %49 = vst.msk [vmem:[#allocation2] sm:$0xff] %vm48_vm0, %v270_v0  ;;  %v65_v3 = vld [vmem:[#allocation6 + $0x10] sm:$0xff]  ;;  %v67_v4 = vpack.c.bf16 %v64_v2, %v63_v1  ;;  %v66_v5 = vld [vmem:[#allocation6 + $0x18] sm:$0xff]  ;;  %s271_s11 = smov [#allocation8]  }
  0x28   :  { %50 = vst.msk [vmem:[#allocation2 + $0x8] sm:$0xff] %vm48_vm0, %v270_v0  ;;  %52 = vst.msk [vmem:[#allocation2 + $0x18] sm:$0xff] %vm48_vm0, %v270_v0  ;;  %v57_v6 = vld [vmem:[#allocation3] sm:$0xff]  ;;  %v58_v7 = vld [vmem:[#allocation3 + $0x8] sm:$0xff]  ;;  %v68_v8 = vpack.c.bf16 %v66_v5, %v65_v3  ;;  %s160_s12 = sshll.u32 %s271_s11, 4  ;;  %s161_s12 = int_to_ptr.vmem [resolvable:$true] %s160_s12 }
  0x29   :  { %v61_v9 = vpack.c.bf16 %v58_v7, %v57_v6  ;;  %180 = vmatprep.subr.bf16.mxu0 %v67_v4  ;;  %v59_v10 = vld [vmem:[#allocation3 + $0x10] sm:$0xff]  ;;  %v60_v11 = vld [vmem:[#allocation3 + $0x18] sm:$0xff]  ;;  %v175_v25 = vld [vmem:[%s356_s2] ss:$0 sm:$0xff]  ;;  %s238_s2 = scalar_lea.vmem %s161_s12, 512  ;;  %p243_p3 = scmp.lt.s32.totalorder %s161_s12, %s161_s12 }
  0x2a   :  { %181 = vmatpush3.bf16.msra.mxu0 %v67_v4  ;;  %v62_v12 = vpack.c.bf16 %v60_v11, %v59_v10  ;;  %p239_p2 = scmp.ne.s32.totalorder %s161_s12, %s238_s2  ;;  %p244_p4 = scmp.lt.s32.totalorder %s238_s2, %s238_s2 }
  0x2b   :  { %184 = vmatprep.mubr.msk.bf16.mxu0 %vm48_vm0, %v61_v9  ;;  %182 = vmatprep.subr.bf16.mxu0 %v68_v8 }
  0x2c   :  { %p245_p5 = por %p244_p4, %p243_p3 }
  0x2e   :  { %183 = vmatpush3.bf16.msra.mxu0 %v68_v8  ;;  %v55_v13 = vld [vmem:[#allocation2 + $0x10] sm:$0xff]  ;;  %v53_v14 = vld [vmem:[#allocation2] sm:$0xff]  ;;  %p246_p6 = pnand %p245_p5, %p239_p2 }
  0x2f   :  { %v56_v16 = vld [vmem:[#allocation2 + $0x18] sm:$0xff]  ;;  %v54_v19 = vld [vmem:[#allocation2 + $0x8] sm:$0xff] }
  0x31   :  { %185 = vmatmul.mubr.msk.bf16.vlgmr.msra.gmra.mrb[0].mxu0 %vm48_vm0, %v62_v12 }
 0x104   :  { %v186_v15 = vpop.f32.mrb[0].mxu0 }
 0x105   :  { %v127_v17 = vadd.f32 %v186_v15, %v55_v13  ;;  %v110_v18 = vpop.f32.mrb[1].mxu0 }
 0x106   :  { %v125_v20 = vadd.f32 %v110_v18, %v53_v14  ;;  %v187_v21 = vpop.f32.mrb[2].mxu0 }
 0x107   :  { %131 = vst.msk [vmem:[#allocation2 + $0x10] sm:$0xff] %vm48_vm0, %v127_v17  ;;  %v128_v22 = vadd.f32 %v187_v21, %v56_v16  ;;  %v113_v23 = vpop.f32.mrb[3].mxu0 }
 0x108   :  { %129 = vst.msk [vmem:[#allocation2] sm:$0xff] %vm48_vm0, %v125_v20  ;;  %v126_v24 = vadd.f32 %v113_v23, %v54_v19 }
 0x109   :  { %132 = vst.msk [vmem:[#allocation2 + $0x18] sm:$0xff] %vm48_vm0, %v128_v22 }
 0x10a   :  { %130 = vst.msk [vmem:[#allocation2 + $0x8] sm:$0xff] %vm48_vm0, %v126_v24 }
 0x10e   :  { %v138_v26 = vld [vmem:[#allocation2 + $0x10] sm:$0xff] }
 0x10f   :  { %v136_v27 = vld [vmem:[#allocation2] sm:$0xff]  ;;  %v149_v28 = vadd.f32 %v175_v25, %v138_v26 }
 0x110   :  { %v139_v29 = vld [vmem:[#allocation2 + $0x18] sm:$0xff]  ;;  %v147_v30 = vadd.f32 %v175_v25, %v136_v27 }
 0x111   :  { %v137_v31 = vld [vmem:[#allocation2 + $0x8] sm:$0xff]  ;;  %v150_v32 = vadd.f32 %v175_v25, %v139_v29  ;;  %153 = vst.msk [vmem:[#allocation8 + $0x10] sm:$0xff] %vm48_vm0, %v149_v28 }
 0x112   :  { %v148_v33 = vadd.f32 %v175_v25, %v137_v31  ;;  %151 = vst.msk [vmem:[#allocation8] sm:$0xff] %vm48_vm0, %v147_v30 }
 0x113   :  { %154 = vst.msk [vmem:[#allocation8 + $0x18] sm:$0xff] %vm48_vm0, %v150_v32 }
 0x114   :  { %152 = vst.msk [vmem:[#allocation8 + $0x8] sm:$0xff] %vm48_vm0, %v148_v33 }
 0x115   :  { %249 = shalt.err (!%p246_p6)
}
 0x116   :  { %s250_s15 = scalar_lea.hbm %s357_s3, 512 }
 0x117   :  { %p251_p7 = scmp.ne.s32.totalorder %s357_s3, %s250_s15  ;;  %p254_p8 = scmp.lt.u32.totalorder %s250_s15, %s357_s3 }
 0x119   :  { %p256_p9 = pnand %p254_p8, %p251_p7 }
 0x11b   :  { %259 = shalt.err (!%p256_p9)
}
 0x11c   :  { %166 = dma.vmem_to_hbm [thread:$0]  %s161_s12, 512, %s357_s3, [#allocation5], %s267_s22, %s267_s22, %s268_s23  }
 0x11d   :  { %264 = dma.done.wait [#allocation5], 512  }
 0x11e   :  { %265 = vsyncadd [#allocation5], 4294966784 }
 0x11f   :  { %170 = vsyncpa [#allocation4], 1 }
 0x120   :  { %171 = vsyncpa [#allocation7], 1 }
 0x121   :  { %172 = vsyncpa [#allocation5], 1 }

</bundles_post_ra>
